<compile_context>
chip_gen: v7x
topology: tpu7x:2x2x1
jax: 0.10.0
libtpu: 0.0.40
codegen_flags: <defaults>
</compile_context>

<pallas_src>
import functools
import math

import jax
import jax.numpy as jnp
from jax.experimental import pallas as pl
from jax.experimental.pallas import tpu as pltpu


def _layernorm_kernel(x_ref, gamma_ref, beta_ref, o_ref, *, eps, n_feat):
    # x_ref: (b_tile, F) lane-dense block, one row per sample.
    x = x_ref[...].astype(jnp.float32)

    # Two-pass statistics: numerically robust, and x is already in VMEM so the
    # second traversal costs no extra HBM traffic.
    s = jnp.sum(x, axis=-1, keepdims=True)                  # (b, 1)
    mean = s * (1.0 / n_feat)
    d = x - mean                                            # reused below
    # torch.Tensor.std defaults to the unbiased estimator (divide by n - 1).
    var = jnp.maximum(jnp.sum(d * d, axis=-1, keepdims=True) / (n_feat - 1), 0.0)
    inv = 1.0 / (jnp.sqrt(var) + eps)                       # eps added to std

    g = gamma_ref[...].astype(jnp.float32)                  # (1, F)
    b = beta_ref[...].astype(jnp.float32)                   # (1, F)
    y = d * inv                                             # (b, F)
    o_ref[...] = (y * g + b).astype(o_ref.dtype)


def _vmem_budget_bytes():
    """~80% of this chip's VMEM, capped at 100 MiB (safe on v5e/v6e/v7x)."""
    cap = None
    try:
        info = pltpu.get_tpu_info()
        cap = getattr(info, "vmem_capacity_bytes", None)
    except Exception:
        cap = None
    if not cap:
        cap = 64 << 20  # conservative default: v7x per-TensorCore VMEM
    return min(int(cap * 0.8), 100 << 20)


def _pick_batch_tile(n, bytes_per_row, itemsize, vmem_budget):
    """Rows (samples) per grid step.

    Rows are fully independent, so any tile works; we want:
      * a multiple of the sublane pack (8 f32 / 16 bf16 / 32 int8),
      * ~4 MiB of input HBM traffic per step (amortizes ~0.35us step overhead),
      * 2x double-buffered (in + out) blocks plus f32 temporaries within the
        VMEM budget,
      * at least 2 grid steps when possible (v7x megacore split).
    """
    pack = {4: 8, 2: 16, 1: 32}.get(itemsize, 8)
    if n <= pack:
        return n  # block dim == full array dim satisfies the (8,128) rule

    # Per-row VMEM: double-buffered in + out blocks in x.dtype, plus ~3
    # f32-sized temporaries for the compute (x upcast, d, output staging).
    f32_row = (bytes_per_row // itemsize) * 4
    per_row_vmem = 4 * bytes_per_row + 3 * f32_row
    cap_rows = max(pack, vmem_budget // per_row_vmem)

    target_rows = max(pack, (4 << 20) // max(bytes_per_row, 1))
    b = min(cap_rows, target_rows)
    # Keep >= 2 grid steps so the "parallel" batch axis can shard across the
    # two TensorCores on v7x.
    b = min(b, max(pack, (n + 1) // 2))
    # Round down to a full sublane pack.
    b = max(pack, (b // pack) * pack)
    return min(b, n)


def layer_norm(x, gamma, beta, *, eps=1e-5):
    """x: (N, C, *spatial); gamma, beta: (C,). Returns same shape/dtype as x."""
    orig_shape = x.shape
    N, C = x.shape[0], x.shape[1]
    L = math.prod(x.shape[2:]) if x.ndim > 2 else 1
    F = C * L
    assert F > 1, "per-sample unbiased std needs more than one element"

    # Fully lane-dense, sublane-packed layout: one sample per row.
    x2 = x.reshape(N, F)
    # Per-channel affine broadcast over spatial -> expand to per-feature.
    gamma2 = jnp.repeat(gamma.astype(jnp.float32), L).reshape(1, F)
    beta2 = jnp.repeat(beta.astype(jnp.float32), L).reshape(1, F)

    itemsize = x.dtype.itemsize
    bytes_per_row = F * itemsize
    vmem_budget = _vmem_budget_bytes()
    b_tile = _pick_batch_tile(N, bytes_per_row, itemsize, vmem_budget)
    grid = (pl.cdiv(N, b_tile),)  # tail block may be padded: rows are
    # independent and padded-row outputs are discarded, so this is safe.
    # Do NOT add any cross-row reduction without revisiting this.

    kernel = functools.partial(_layernorm_kernel, eps=eps, n_feat=F)

    out2 = pl.pallas_call(
        kernel,
        out_shape=jax.ShapeDtypeStruct((N, F), x.dtype),
        grid_spec=pltpu.PrefetchScalarGridSpec(
            num_scalar_prefetch=0,
            grid=grid,
            in_specs=[
                pl.BlockSpec((b_tile, F), lambda i: (i, 0)),
                pl.BlockSpec((1, F), lambda i: (0, 0)),
                pl.BlockSpec((1, F), lambda i: (0, 0)),
            ],
            out_specs=pl.BlockSpec((b_tile, F), lambda i: (i, 0)),
        ),
        compiler_params=pltpu.CompilerParams(
            dimension_semantics=("parallel",),
            vmem_limit_bytes=vmem_budget,
        ),
    )(x2, gamma2, beta2)

    return out2.reshape(orig_shape)


def layer_norm_ref(x, gamma, beta, *, eps=1e-5):
    """Pure-JAX reference mirroring the PyTorch forward (non-fp16 path)."""
    N = x.shape[0]
    xf = x.reshape(N, -1).astype(jnp.float32)
    mean = xf.mean(axis=1)
    std = jnp.sqrt(((xf - mean[:, None]) ** 2).sum(axis=1) / (xf.shape[1] - 1))
    shape = (N,) + (1,) * (x.ndim - 1)
    y = (x.astype(jnp.float32) - mean.reshape(shape)) / (std.reshape(shape) + eps)
    gshape = (1, -1) + (1,) * (x.ndim - 2)
    y = y * gamma.reshape(gshape) + beta.reshape(gshape)
    return y.astype(x.dtype)


if __name__ == "__main__":
    key = jax.random.PRNGKey(0)
    kx, kg = jax.random.split(key)

    N, C, H, W = 2, 4, 16, 16
    num_features = C

    x = jax.random.normal(kx, (N, C, H, W), dtype=jnp.float32)
    # nn.Parameter(torch.Tensor(num_features).uniform_()) -> U[0, 1)
    gamma = jax.random.uniform(kg, (num_features,), dtype=jnp.float32)
    beta = jnp.zeros((num_features,), dtype=jnp.float32)

    out = layer_norm(x, gamma, beta, eps=1e-5)
    out = jax.block_until_ready(out)

    ref = layer_norm_ref(x, gamma, beta, eps=1e-5)
    assert out.shape == x.shape and out.dtype == x.dtype
    assert jnp.allclose(out, ref, atol=1e-5, rtol=1e-5)

    print("KERNEL_OK")
</pallas_src>

<mosaic_0001>
module attributes {stable_mosaic.version = 11 : i64} {
  func.func @_layernorm_kernel(%arg0: i32, %arg1: memref<2x1024xf32, #tpu.memory_space<vmem>>, %arg2: memref<1x1024xf32, #tpu.memory_space<vmem>>, %arg3: memref<1x1024xf32, #tpu.memory_space<vmem>>, %arg4: memref<2x1024xf32, #tpu.memory_space<vmem>>) attributes {dimension_semantics = [#tpu.dimension_semantics<parallel>], iteration_bounds = array<i64: 1>, scalar_prefetch = 0 : i64, scratch_operands = 0 : i64, tpu.core_type = #tpu.core_type<tc>, window_params = [{transform_indices = @transform_0, window_bounds = array<i64: 2, 1024>}, {pipeline_mode = #tpu.pipeline_mode<synchronous>, transform_indices = @transform_1, window_bounds = array<i64: 1, 1024>}, {pipeline_mode = #tpu.pipeline_mode<synchronous>, transform_indices = @transform_2, window_bounds = array<i64: 1, 1024>}, {transform_indices = @transform_3, window_bounds = array<i64: 2, 1024>}]} {
    %c0 = arith.constant 0 : index
    %c0_0 = arith.constant 0 : index
    %0 = vector.load %arg1[%c0, %c0_0] : memref<2x1024xf32, #tpu.memory_space<vmem>>, vector<2x1024xf32>
    %cst = arith.constant dense<0.000000e+00> : vector<2xf32>
    %1 = vector.multi_reduction <add>, %0, %cst [1] : vector<2x1024xf32> to vector<2xf32>
    %2 = vector.shape_cast %1 : vector<2xf32> to vector<2x1xf32>
    %cst_1 = arith.constant 9.765625E-4 : f32
    %3 = vector.broadcast %cst_1 : f32 to vector<2x1xf32>
    %4 = arith.mulf %2, %3 : vector<2x1xf32>
    %5 = vector.broadcast %4 : vector<2x1xf32> to vector<2x1024xf32>
    %6 = arith.subf %0, %5 : vector<2x1024xf32>
    %7 = arith.mulf %6, %6 : vector<2x1024xf32>
    %cst_2 = arith.constant dense<0.000000e+00> : vector<2xf32>
    %8 = vector.multi_reduction <add>, %7, %cst_2 [1] : vector<2x1024xf32> to vector<2xf32>
    %9 = vector.shape_cast %8 : vector<2xf32> to vector<2x1xf32>
    %cst_3 = arith.constant 1.023000e+03 : f32
    %10 = vector.broadcast %cst_3 : f32 to vector<2x1xf32>
    %11 = arith.divf %9, %10 : vector<2x1xf32>
    %cst_4 = arith.constant 0.000000e+00 : f32
    %12 = vector.broadcast %cst_4 : f32 to vector<2x1xf32>
    %13 = arith.maximumf %11, %12 : vector<2x1xf32>
    %14 = math.sqrt %13 : vector<2x1xf32>
    %cst_5 = arith.constant 9.99999974E-6 : f32
    %15 = vector.broadcast %cst_5 : f32 to vector<2x1xf32>
    %16 = arith.addf %14, %15 : vector<2x1xf32>
    %cst_6 = arith.constant 1.000000e+00 : f32
    %17 = vector.broadcast %cst_6 : f32 to vector<2x1xf32>
    %18 = arith.divf %17, %16 : vector<2x1xf32>
    %c0_7 = arith.constant 0 : index
    %c0_8 = arith.constant 0 : index
    %19 = vector.load %arg2[%c0_7, %c0_8] : memref<1x1024xf32, #tpu.memory_space<vmem>>, vector<1x1024xf32>
    %c0_9 = arith.constant 0 : index
    %c0_10 = arith.constant 0 : index
    %20 = vector.load %arg3[%c0_9, %c0_10] : memref<1x1024xf32, #tpu.memory_space<vmem>>, vector<1x1024xf32>
    %21 = vector.broadcast %18 : vector<2x1xf32> to vector<2x1024xf32>
    %22 = arith.mulf %6, %21 : vector<2x1024xf32>
    %23 = vector.broadcast %19 : vector<1x1024xf32> to vector<2x1024xf32>
    %24 = arith.mulf %22, %23 : vector<2x1024xf32>
    %25 = vector.broadcast %20 : vector<1x1024xf32> to vector<2x1024xf32>
    %26 = arith.addf %24, %25 : vector<2x1024xf32>
    %c0_11 = arith.constant 0 : index
    %c0_12 = arith.constant 0 : index
    %27 = vector.load %arg4[%c0_11, %c0_12] : memref<2x1024xf32, #tpu.memory_space<vmem>>, vector<2x1024xf32>
    tpu.vector_store %arg4[%c0_11, %c0_12], %26 {strides = array<i32>} : memref<2x1024xf32, #tpu.memory_space<vmem>>, vector<2x1024xf32>,
    return
  }
  func.func @transform_0(%arg0: i32) -> (i32, i32) {
    %c0_i32 = arith.constant 0 : i32
    %c0_i32_0 = arith.constant 0 : i32
    return %arg0, %c0_i32 : i32, i32
  }
  func.func @transform_1(%arg0: i32) -> (i32, i32) {
    %c0_i32 = arith.constant 0 : i32
    %c0_i32_0 = arith.constant 0 : i32
    %c0_i32_1 = arith.constant 0 : i32
    return %c0_i32, %c0_i32_0 : i32, i32
  }
  func.func @transform_2(%arg0: i32) -> (i32, i32) {
    %c0_i32 = arith.constant 0 : i32
    %c0_i32_0 = arith.constant 0 : i32
    %c0_i32_1 = arith.constant 0 : i32
    return %c0_i32, %c0_i32_0 : i32, i32
  }
  func.func @transform_3(%arg0: i32) -> (i32, i32) {
    %c0_i32 = arith.constant 0 : i32
    %c0_i32_0 = arith.constant 0 : i32
    return %arg0, %c0_i32 : i32, i32
  }
}

</mosaic_0001>

<bundles_post_ra>
// kernel: tpu_custom_call.1
= control target key start
LH: loop header
LB: loop body
LE: loop exit
PB: predicated region body
PF: predicated region fallthrough
CT: control target
= control target key end

     0   :  { %8 = vsyncpa [#allocation3], 0  ;;  %s615_s0 = inlined_call_operand.hbm [shape: f32[2,1024], index: 0, kind: input, shape index: {}]   ;;  %s616_s1 = inlined_call_operand.hbm [shape: f32[1,1024], index: 1, kind: input, shape index: {}]   ;;  %s617_s2 = inlined_call_operand.hbm [shape: f32[1,1024], index: 2, kind: input, shape index: {}]   ;;  %s618_s3 = inlined_call_operand.hbm [shape: f32[2,1024], index: 3, kind: output, shape index: {}]  }
   0x1   :  { %9 = vsyncpa [#allocation6], 0 }
   0x2   :  { %10 = vsyncpa [#allocation4], 0  ;;  %s481_s12 = smov [#allocation5]   ;;  %s482_s14 = smov [#allocation2]  }
   0x3   :  { %s27_s13 = sshll.u32 %s481_s12, 4  ;;  %s17_s15 = sshll.u32 %s482_s14, 4  ;;  %s28_s13 = int_to_ptr.vmem [resolvable:$true] %s27_s13  ;;  %s18_s15 = int_to_ptr.vmem [resolvable:$true] %s17_s15 }
   0x4   :  { %s387_s18 = scalar_lea.hbm %s616_s1, 128 }
   0x5   :  { %p388_p0 = scmp.ne.s32.totalorder %s616_s1, %s387_s18  ;;  %p391_p1 = scmp.lt.u32.totalorder %s387_s18, %s616_s1 }
   0x7   :  { %p393_p2 = pnand %p391_p1, %p388_p0 }
   0x9   :  { %396 = shalt.err (!%p393_p2)
}
   0xa   :  { %s397_s23 = scalar_lea.vmem %s28_s13, 128  ;;  %p402_p4 = scmp.lt.s32.totalorder %s28_s13, %s28_s13 }
   0xb   :  { %p398_p3 = scmp.ne.s32.totalorder %s28_s13, %s397_s23  ;;  %p403_p5 = scmp.lt.s32.totalorder %s397_s23, %s397_s23 }
   0xd   :  { %p404_p6 = por %p403_p5, %p402_p4 }
   0xf   :  { %p405_p7 = pnand %p404_p6, %p398_p3 }
  0x11   :  { %408 = shalt.err (!%p405_p7)
}
  0x12   :  { %30 = dma.hbm_to_vmem [thread:$0]  %s616_s1, 128, %s28_s13, [#allocation6]  }
  0x13   :  { %s409_s28 = scalar_lea.hbm %s615_s0, 256 }
  0x14   :  { %p410_p8 = scmp.ne.s32.totalorder %s615_s0, %s409_s28  ;;  %p413_p9 = scmp.lt.u32.totalorder %s409_s28, %s615_s0 }
  0x16   :  { %p415_p10 = pnand %p413_p9, %p410_p8 }
  0x18   :  { %418 = shalt.err (!%p415_p10)
}
  0x19   :  { %s419_s6 = scalar_lea.vmem %s18_s15, 256  ;;  %p424_p12 = scmp.lt.s32.totalorder %s18_s15, %s18_s15 }
  0x1a   :  { %p420_p11 = scmp.ne.s32.totalorder %s18_s15, %s419_s6  ;;  %p425_p13 = scmp.lt.s32.totalorder %s419_s6, %s419_s6 }
  0x1c   :  { %p426_p0 = por %p425_p13, %p424_p12 }
  0x1e   :  { %p427_p1 = pnand %p426_p0, %p420_p11 }
  0x20   :  { %430 = shalt.err (!%p427_p1)
}
  0x21   :  { %20 = dma.hbm_to_vmem [thread:$0]  %s615_s0, 256, %s18_s15, [#allocation3]  }
  0x22   :  { %s483_s8 = smov [#allocation7]   ;;  %s431_s12 = scalar_lea.hbm %s617_s2, 128 }
  0x23   :  { %s37_s9 = sshll.u32 %s483_s8, 4  ;;  %p432_p2 = scmp.ne.s32.totalorder %s617_s2, %s431_s12  ;;  %s38_s9 = int_to_ptr.vmem [resolvable:$true] %s37_s9 }
  0x24   :  { %p435_p3 = scmp.lt.u32.totalorder %s431_s12, %s617_s2 }
  0x26   :  { %p437_p4 = pnand %p435_p3, %p432_p2 }
  0x28   :  { %440 = shalt.err (!%p437_p4)
}
  0x29   :  { %s441_s18 = scalar_lea.vmem %s38_s9, 128  ;;  %p446_p6 = scmp.lt.s32.totalorder %s38_s9, %s38_s9 }
  0x2a   :  { %p442_p5 = scmp.ne.s32.totalorder %s38_s9, %s441_s18  ;;  %p447_p7 = scmp.lt.s32.totalorder %s441_s18, %s441_s18 }
  0x2c   :  { %p448_p8 = por %p447_p7, %p446_p6 }
  0x2e   :  { %p449_p9 = pnand %p448_p8, %p442_p5 }
  0x30   :  { %452 = shalt.err (!%p449_p9)
}
  0x31   :  { %40 = dma.hbm_to_vmem [thread:$0]  %s617_s2, 128, %s38_s9, [#allocation6]  }
  0x32   :  { %475 = dma.done.wait [#allocation3], 256  }
  0x33   :  { %476 = vsyncadd [#allocation3], 4294967040 }
  0x34   :  { %477 = dma.done.wait [#allocation6], 256  }
  0x35   :  { %478 = vsyncadd [#allocation6], 4294967040  ;;  %v58_v0 = vlaneseq  ;;  %v484_v1 = vmov 1983009808   ;;  %v50_v6 = vld [vmem:[#allocation2] sm:$0xff]  ;;  %v51_v7 = vld [vmem:[#allocation2 + $0x8] sm:$0xff] }
  0x36   :  { %v56_v2 = vunpack.c.l.s4 %v484_v1  ;;  %v54_v8 = vcombine.high %v50_v6, %v50_v6  ;;  %vm96_vm0 = vcmask 1041408   ;;  %v71_v12 = vcombine.high %v51_v7, %v51_v7  ;;  %s486_s2 = smov [#allocation8]  }
  0x37   :  { %v543_v3 = vshrl.u32 %v58_v0, 7  ;;  %v485_v33 = vmov 269488144   ;;  %s365_s19 = sshll.u32 %s486_s2, 4  ;;  %s366_s19 = int_to_ptr.vmem [resolvable:$true] %s365_s19 }
  0x38   :  { %v57_v4 = vunpack.c.0.s8 %v56_v2  ;;  %v117_v34 = vunpack.c.l.s4 %v485_v33  ;;  %s453_s20 = scalar_lea.vmem %s366_s19, 256  ;;  %p458_p11 = scmp.lt.s32.totalorder %s366_s19, %s366_s19 }
  0x39   :  { %p454_p10 = scmp.ne.s32.totalorder %s366_s19, %s453_s20  ;;  %p459_p12 = scmp.lt.s32.totalorder %s453_s20, %s453_s20 }
  0x3a   :  { %v546_v5 = vsub.s32 %v57_v4, %v543_v3  ;;  %v118_v35 = vunpack.c.0.s8 %v117_v34 }
  0x3b   :  { %p460_p13 = por %p459_p12, %p458_p11 }
  0x3c   :  { %v61_v9 = vrot.slane %v50_v6, %v546_v5  ;;  %v68_v10 = vrot.slane %v54_v8, %v546_v5  ;;  %v78_v13 = vrot.slane %v51_v7, %v546_v5  ;;  %v85_v19 = vrot.slane %v71_v12, %v546_v5 }
  0x3d   :  { %v561_v36 = vsub.s32 %v118_v35, %v543_v3  ;;  %v222_v12 = vsub.s32 1, %v543_v3  ;;  %p461_p0 = pnand %p460_p13, %p454_p10 }
  0x3e   :  { %v69_v11 = vcombine.high %v61_v9, %v61_v9  ;;  %v97_v14 = vsel %vm96_vm0, %v61_v9, 0.0  ;;  %v70_v15 = vcombine.high %v68_v10, %v68_v10  ;;  %v100_v17 = vsel %vm96_vm0, %v68_v10, 0.0 }
  0x3f   :  { %v86_v20 = vcombine.high %v78_v13, %v78_v13  ;;  %v104_v23 = vsel %vm96_vm0, %v78_v13, 0.0  ;;  %v87_v25 = vcombine.high %v85_v19, %v85_v19  ;;  %v108_v28 = vsel %vm96_vm0, %v85_v19, 0.0 }
  0x40   :  { %v98_v16 = vsel %vm96_vm0, %v69_v11, 0.0  ;;  %v102_v21 = vsel %vm96_vm0, %v70_v15, 0.0  ;;  %v218_v11 = vsub.s32 0, %v543_v3  ;;  %v226_v13 = vsub.s32 2, %v543_v3  ;;  %v202_v15 = vld [vmem:[#allocation5] sm:$0xff] }
  0x41   :  { %v99_v18 = vadd.f32 %v98_v16, %v97_v14  ;;  %v106_v26 = vsel %vm96_vm0, %v86_v20, 0.0  ;;  %v110_v30 = vsel %vm96_vm0, %v87_v25, 0.0  ;;  %v230_v16 = vsub.s32 3, %v543_v3 }
  0x42   :  { %v242_v20 = vsub.s32 6, %v543_v3  ;;  %v219_v25 = vrot.slane %v202_v15, %v218_v11 }
  0x43   :  { %v101_v22 = vadd.f32 %v100_v17, %v99_v18  ;;  %v234_v17 = vsub.s32 4, %v543_v3  ;;  %v238_v18 = vsub.s32 5, %v543_v3 }
  0x45   :  { %v103_v24 = vadd.f32 %v102_v21, %v101_v22  ;;  %v246_v21 = vsub.s32 7, %v543_v3 }
  0x47   :  { %v105_v27 = vadd.f32 %v104_v23, %v103_v24  ;;  %v203_v23 = vld [vmem:[#allocation7] sm:$0xff]  ;;  %v247_v33 = vrot.slane %v202_v15, %v246_v21 }
  0x48   :  { %v290_v34 = vrot.slane %v203_v23, %v218_v11  ;;  %v294_v35 = vrot.slane %v203_v23, %v222_v12  ;;  %v310_v3 = vrot.slane %v203_v23, %v238_v18 }
  0x49   :  { %v107_v29 = vadd.f32 %v106_v26, %v105_v27  ;;  %v223_v26 = vrot.slane %v202_v15, %v222_v12 }
  0x4b   :  { %v109_v31 = vadd.f32 %v108_v28, %v107_v29  ;;  %v227_v28 = vrot.slane %v202_v15, %v226_v13  ;;  %v231_v29 = vrot.slane %v202_v15, %v230_v16 }
  0x4d   :  { %v111_v32 = vadd.f32 %v110_v30, %v109_v31  ;;  %v235_v30 = vrot.slane %v202_v15, %v234_v17  ;;  %v239_v31 = vrot.slane %v202_v15, %v238_v18 }
  0x4f   :  { %112 = vadd.xlane.f32.xlu0 %v111_v32  ;;  %v243_v32 = vrot.slane %v202_v15, %v242_v20 }
  0xdc   :  { %v113_v37 = vpop.xlane.xlu0 %112 }
  0xdd   :  { %v114_v38 = vmul.f32 0.0009765625, %v113_v37  ;;  %v298_v37 = vrot.slane %v203_v23, %v226_v13 }
  0xdf   :  { %v122_v39 = vrot.slane %v114_v38, %v561_v36  ;;  %v302_v38 = vrot.slane %v203_v23, %v230_v16 }
  0xe1   :  { %v564_v40 = vsub.f32 %v50_v6, %v122_v39  ;;  %v566_v41 = vsub.f32 %v51_v7, %v122_v39  ;;  %v306_v39 = vrot.slane %v203_v23, %v234_v17 }
  0xe3   :  { %v126_v42 = vmul.f32 %v564_v40, %v564_v40  ;;  %v127_v43 = vmul.f32 %v566_v41, %v566_v41 }
  0xe5   :  { %v130_v44 = vcombine.high %v126_v42, %v126_v42  ;;  %v137_v45 = vrot.slane %v126_v42, %v546_v5  ;;  %v154_v48 = vrot.slane %v127_v43, %v546_v5  ;;  %v147_v52 = vcombine.high %v127_v43, %v127_v43 }
  0xe6   :  { %v314_v42 = vrot.slane %v203_v23, %v242_v20  ;;  %v318_v43 = vrot.slane %v203_v23, %v246_v21 }
  0xe7   :  { %v144_v46 = vrot.slane %v130_v44, %v546_v5  ;;  %v145_v47 = vcombine.high %v137_v45, %v137_v45  ;;  %v172_v49 = vsel %vm96_vm0, %v137_v45, 0.0  ;;  %v161_v56 = vrot.slane %v147_v52, %v546_v5 }
  0xe8   :  { %v162_v57 = vcombine.high %v154_v48, %v154_v48  ;;  %v179_v60 = vsel %vm96_vm0, %v154_v48, 0.0  ;;  %v248_v44 = vcombine.low %v219_v25, %v223_v26  ;;  %v249_v45 = vcombine.low %v227_v28, %v231_v29 }
  0xe9   :  { %v173_v50 = vsel %vm96_vm0, %v145_v47, 0.0  ;;  %v146_v51 = vcombine.high %v144_v46, %v144_v46  ;;  %v175_v54 = vsel %vm96_vm0, %v144_v46, 0.0  ;;  %v163_v62 = vcombine.high %v161_v56, %v161_v56 }
  0xea   :  { %v174_v53 = vadd.f32 %v173_v50, %v172_v49  ;;  %v181_v63 = vsel %vm96_vm0, %v162_v57, 0.0  ;;  %v183_v1 = vsel %vm96_vm0, %v161_v56, 0.0  ;;  %v265_v46 = vcombine.low %v235_v30, %v239_v31 }
  0xeb   :  { %v177_v58 = vsel %vm96_vm0, %v146_v51, 0.0  ;;  %v185_v4 = vsel %vm96_vm0, %v163_v62, 0.0  ;;  %v266_v47 = vcombine.low %v243_v32, %v247_v33  ;;  %v319_v48 = vcombine.low %v290_v34, %v294_v35 }
  0xec   :  { %v176_v55 = vadd.f32 %v175_v54, %v174_v53  ;;  %v320_v49 = vcombine.low %v298_v37, %v302_v38  ;;  %v336_v50 = vcombine.low %v306_v39, %v310_v3  ;;  %v337_v51 = vcombine.low %v314_v42, %v318_v43 }
  0xed   :  { %v256_v52 = vrot.slane %v248_v44, %v546_v5  ;;  %v263_v53 = vrot.slane %v249_v45, %v546_v5  ;;  %v273_v54 = vrot.slane %v265_v46, %v546_v5  ;;  %v327_v56 = vrot.slane %v319_v48, %v546_v5 }
  0xee   :  { %v178_v59 = vadd.f32 %v177_v58, %v176_v55  ;;  %v280_v55 = vrot.slane %v266_v47, %v546_v5  ;;  %v334_v57 = vrot.slane %v320_v49, %v546_v5  ;;  %v344_v58 = vrot.slane %v336_v50, %v546_v5 }
  0xef   :  { %v264_v62 = vcombine.low %v256_v52, %v263_v53 }
  0xf0   :  { %v180_v61 = vadd.f32 %v179_v60, %v178_v59  ;;  %v351_v59 = vrot.slane %v337_v51, %v546_v5 }
  0xf2   :  { %v182_v0 = vadd.f32 %v181_v63, %v180_v61  ;;  %v281_v63 = vcombine.low %v273_v54, %v280_v55 }
  0xf4   :  { %v184_v2 = vadd.f32 %v183_v1, %v182_v0 }
  0xf6   :  { %v186_v6 = vadd.f32 %v185_v4, %v184_v2  ;;  %v335_v2 = vcombine.low %v327_v56, %v334_v57  ;;  %v352_v4 = vcombine.low %v344_v58, %v351_v59 }
  0xf8   :  { %187 = vadd.xlane.f32.xlu0 %v186_v6 }
 0x185   :  { %v188_v7 = vpop.xlane.xlu0 %187 }
 0x186   :  { %v190_v8 = vmul.f32 0.0009775171, %v188_v7 }
 0x188   :  { %v191_v9 = vmax.f32 %v190_v8, 0.0 }
 0x18a   :  { %383 = vrsqrt.f32 %v191_v9  ;;  %vm194_vm1 = vcmp.eq.f32.partialorder %v191_v9, inf  ;;  %v197_v19 = vand.u32 2147483648, %v191_v9  ;;  %vm196_vm2 = vcmp.eq.f32.partialorder %v191_v9, 0.0 }
 0x194   :  { %v384_v10 = vpop.eup %383 }
 0x195   :  { %v193_v14 = vmul.f32 %v384_v10, %v191_v9 }
 0x197   :  { %v195_v22 = vsel %vm194_vm1, %v191_v9, %v193_v14 }
 0x198   :  { %v198_v24 = vsel %vm196_vm2, %v197_v19, %v195_v22 }
 0x199   :  { %v199_v27 = vadd.f32 1e-05, %v198_v24 }
 0x19b   :  { %385 = vrcp.f32 %v199_v27 }
 0x1a5   :  { %v386_v60 = vpop.eup %385 }
 0x1a6   :  { %v211_v61 = vrot.slane %v386_v60, %v561_v36 }
 0x1a8   :  { %v213_v0 = vmul.f32 %v211_v61, %v564_v40  ;;  %v214_v1 = vmul.f32 %v211_v61, %v566_v41 }
 0x1aa   :  { %v284_v6 = vmul.f32 %v264_v62, %v213_v0  ;;  %v285_v7 = vmul.f32 %v281_v63, %v214_v1 }
 0x1ac   :  { %v355_v8 = vadd.f32 %v335_v2, %v284_v6  ;;  %v356_v9 = vadd.f32 %v352_v4, %v285_v7 }
 0x1ae   :  { %357 = vst [vmem:[#allocation8] sm:$0xff] %v355_v8  ;;  %358 = vst [vmem:[#allocation8 + $0x8] sm:$0xff] %v356_v9 }
 0x1af   :  { %464 = shalt.err (!%p461_p0)
}
 0x1b0   :  { %s465_s23 = scalar_lea.hbm %s618_s3, 256 }
 0x1b1   :  { %p466_p1 = scmp.ne.s32.totalorder %s618_s3, %s465_s23  ;;  %p469_p2 = scmp.lt.u32.totalorder %s465_s23, %s618_s3 }
 0x1b3   :  { %p471_p3 = pnand %p469_p2, %p466_p1 }
 0x1b5   :  { %474 = shalt.err (!%p471_p3)
}
 0x1b6   :  { %368 = dma.vmem_to_hbm [thread:$0]  %s366_s19, 256, %s618_s3, [#allocation4]  }
 0x1b7   :  { %479 = dma.done.wait [#allocation4], 256  }
 0x1b8   :  { %480 = vsyncadd [#allocation4], 4294967040 }
 0x1b9   :  { %372 = vsyncpa [#allocation3], 1 }
 0x1ba   :  { %373 = vsyncpa [#allocation6], 1 }
 0x1bb   :  { %374 = vsyncpa [#allocation4], 1 }

</bundles_post_ra>
